<compile_context>
chip_gen: v6e
topology: v6e:2x2x1
jax: 0.10.0
libtpu: 0.0.40
codegen_flags: <defaults>
</compile_context>

<pallas_src>
import functools

import jax
import jax.numpy as jnp
import numpy as np
from jax.experimental import pallas as pl
from jax.experimental.pallas import tpu as pltpu

_EPS = 1e-6  # matches the torch module's `x_max - 1e-06`


def _round_up(v, m):
    return -(-v // m) * m


def _vmem_budgets():
    """Generation-conditional (per-step block budget, scoped vmem limit)."""
    vmem = None
    try:
        info = pltpu.get_tpu_info()
        vmem = int(getattr(info, "vmem_capacity_bytes", 0)) or None
    except Exception:
        vmem = None
    if vmem is None or vmem <= (64 << 20):
        # v7x (64 MiB per TensorCore) or unknown: stay conservative.
        return 4 << 20, 44 << 20
    # v5e / v6e: 128 MiB physical VMEM.
    return 12 << 20, 96 << 20


def _choose_row_tile(n, d, itemsize, block_budget_bytes, min_grid=8):
    """Largest sublane-aligned row tile whose per-step working set fits the budget,
    while keeping the grid >= ~min_grid steps (feeds both v7x TensorCores)."""
    sub = max(8, 32 // max(1, itemsize))  # 8 for f32, 16 for bf16, 32 for int8/fp8
    # per-row working set of pass 2: double-buffered input + f32 upcast + f32 `work`
    per_row = d * (2 * itemsize + 12) + 64
    rows_by_bytes = max(sub, block_budget_bytes // per_row)
    rows_by_grid = max(sub, -(-n // min_grid))
    rt = min(rows_by_bytes, rows_by_grid, _round_up(max(n, 1), sub))
    return max(sub, (rt // sub) * sub)


# --------------------------------------------------------------------------------
# Pass 1: per-tile max active count (one int32 per grid step).
# --------------------------------------------------------------------------------
def _count_kernel(x_ref, cnt_ref, *, theta, n_rows, row_tile):
    # Threshold math in float32 (1e-6 underflows one ulp of typical bf16 activations).
    x = x_ref[...].astype(jnp.float32)
    rows, _ = x.shape
    x_max = jnp.max(x, axis=-1, keepdims=True)
    thr = jnp.where(x_max < theta, x_max - _EPS, jnp.float32(theta))
    cnt = jnp.sum((x > thr).astype(jnp.int32), axis=-1, keepdims=True)  # (rows, 1)

    # Mask the ragged tail rows (the last block may overrun n; its data is garbage).
    i = pl.program_id(0)
    rid = i * row_tile + jax.lax.broadcasted_iota(jnp.int32, (rows, 1), 0)
    cnt = jnp.where(rid < n_rows, cnt, 0)

    # One scalar per tile, written into the grid-resident (num_tiles, 1) output.
    tile_max = jnp.max(cnt, axis=0, keepdims=True)  # (1, 1)
    cnt_ref[pl.ds(i, 1), :] = tile_max


# --------------------------------------------------------------------------------
# Pass 2: iterative arg-max top-k with a per-tile dynamic trip count.
# --------------------------------------------------------------------------------
def _topk_kernel(tile_k_ref, x_ref, val_ref, idx_ref, *, theta, k_pad):
    i = pl.program_id(0)
    x = x_ref[...].astype(jnp.float32)
    rows, d = x.shape

    # Recompute threshold/mask from x (cheaper than streaming an (N, D) vals array).
    x_max = jnp.max(x, axis=-1, keepdims=True)
    thr = jnp.where(x_max < theta, x_max - _EPS, jnp.float32(theta))
    work = jnp.where(x > thr, x, jnp.float32(0.0))  # same zeros semantics as torch

    col = jax.lax.broadcasted_iota(jnp.int32, (rows, d), 1)
    kcol = jax.lax.broadcasted_iota(jnp.int32, (rows, k_pad), 1)
    neg = jnp.float32(-jnp.inf)
    sentinel = jnp.int32(d)

    # Per-tile number of picks (scalar-prefetched from pass 1); rows past n in the
    # ragged tail only produce garbage that is never written back to HBM.
    n_picks = jnp.minimum(tile_k_ref[i], jnp.int32(k_pad))

    def body(j, carry):
        work, pend, ovals, oidx = carry
        # Fold the mask-out of the previous pick into this pick's streamed pass:
        # 2 reads + 1 write of `work` per pick instead of 3 reads + 1 write.
        work = jnp.where(col == pend, neg, work)
        m = jnp.max(work, axis=-1, keepdims=True)
        pend = jnp.min(jnp.where(work == m, col, sentinel), axis=-1, keepdims=True)
        # Arithmetic scatter into the small (rows, k_pad) accumulators — no dynamic
        # single-lane stores, one full static store per output after the loop.
        hit = kcol == j
        ovals = jnp.where(hit, m, ovals)
        oidx = jnp.where(hit, pend, oidx)
        return (work, pend, ovals, oidx)

    init = (
        work,
        jnp.full((rows, 1), -1, dtype=jnp.int32),       # col never equals -1
        jnp.zeros((rows, k_pad), jnp.float32),          # zero-fill semantics for free
        jnp.zeros((rows, k_pad), jnp.int32),
    )
    _, _, ovals, oidx = jax.lax.fori_loop(0, n_picks, body, init)

    val_ref[...] = ovals.astype(val_ref.dtype)
    idx_ref[...] = oidx


# --------------------------------------------------------------------------------
# Host wrapper.
# --------------------------------------------------------------------------------
def jump_relu_forward(x, theta):
    theta = float(theta)
    orig_shape = x.shape
    d = int(orig_shape[-1])
    n = int(np.prod(orig_shape[:-1])) if len(orig_shape) > 1 else 1
    x2 = x.reshape(n, d)

    itemsize = jnp.dtype(x.dtype).itemsize
    block_budget, vmem_limit = _vmem_budgets()
    row_tile = _choose_row_tile(n, d, itemsize, block_budget)
    num_tiles = pl.cdiv(n, row_tile)
    grid = (num_tiles,)

    # --- Pass 1: per-tile max active counts (no (N, D) intermediate, no pad copy) --
    counts = pl.pallas_call(
        functools.partial(_count_kernel, theta=theta, n_rows=n, row_tile=row_tile),
        out_shape=jax.ShapeDtypeStruct((num_tiles, 1), jnp.int32),
        grid=grid,
        in_specs=[pl.BlockSpec((row_tile, d), lambda i: (i, 0))],
        # Tiny output stays resident across the whole grid; each step writes its row.
        out_specs=pl.BlockSpec((num_tiles, 1), lambda i: (0, 0)),
        compiler_params=pltpu.CompilerParams(
            dimension_semantics=("arbitrary",),   # resident output block => arbitrary
            vmem_limit_bytes=vmem_limit,
        ),
    )(x2)

    tile_counts = counts.reshape(num_tiles)

    # --- Host glue: data-dependent output width (same semantics as torch) ---------
    max_acts = int(jax.device_get(jnp.max(tile_counts)))
    out_shape = orig_shape[:-1] + (max_acts,)
    if max_acts == 0:
        return (jnp.zeros(out_shape, x.dtype), jnp.zeros(out_shape, jnp.int32))

    # Lane-dense output when D allows it; always a multiple of 8; capped at D.
    mult = 128 if d >= 128 else 8
    k_pad = min(_round_up(max_acts, mult), d)

    # --- Pass 2: per-tile-dynamic top-k, re-reading x and masking in-kernel --------
    vals, idxs = pl.pallas_call(
        functools.partial(_topk_kernel, theta=theta, k_pad=k_pad),
        out_shape=(
            jax.ShapeDtypeStruct((n, k_pad), x.dtype),
            jax.ShapeDtypeStruct((n, k_pad), jnp.int32),
        ),
        grid_spec=pltpu.PrefetchScalarGridSpec(
            num_scalar_prefetch=1,
            grid=grid,
            in_specs=[pl.BlockSpec((row_tile, d), lambda i, tk: (i, 0))],
            out_specs=(
                pl.BlockSpec((row_tile, k_pad), lambda i, tk: (i, 0)),
                pl.BlockSpec((row_tile, k_pad), lambda i, tk: (i, 0)),
            ),
        ),
        compiler_params=pltpu.CompilerParams(
            dimension_semantics=("parallel",),
            vmem_limit_bytes=vmem_limit,
        ),
    )(tile_counts, x2)

    feat_vals = vals[:, :max_acts].reshape(out_shape)
    feat_idx = idxs[:, :max_acts].reshape(out_shape)
    return feat_vals, feat_idx


def _reference(x, theta):
    # pure-JAX reference of the torch forward (up to tie/order ambiguity)
    x_max = jnp.max(x, axis=-1)
    th = jnp.where(x_max < theta, x_max - _EPS, theta)[..., None]
    mask = x > th
    jr = jnp.where(mask, x, 0.0)
    max_acts = int(jnp.max(jnp.sum(mask, axis=-1)))
    v, i = jax.lax.top_k(jr, max_acts)
    return v, i


if __name__ == "__main__":
    key = jax.random.PRNGKey(0)
    # batch=2, seq=8, hidden=32
    x = jax.random.normal(key, (2, 8, 32), dtype=jnp.float32)
    theta = 0.5

    fa, fi = jump_relu_forward(x, theta)
    jax.block_until_ready((fa, fi))

    # sanity check against pure-JAX reference (compare sorted top-k values)
    ref_v, _ = _reference(x, theta)
    assert fa.shape == ref_v.shape, (fa.shape, ref_v.shape)
    got_sorted = jnp.sort(fa, axis=-1)[..., ::-1]
    ref_sorted = jnp.sort(ref_v, axis=-1)[..., ::-1]
    np.testing.assert_allclose(np.asarray(got_sorted), np.asarray(ref_sorted),
                               rtol=1e-6, atol=1e-6)
    # check returned indices actually point at the returned values
    gathered = jnp.take_along_axis(x, fi, axis=-1)
    np.testing.assert_allclose(np.asarray(jnp.where(fa != 0, gathered, fa)),
                               np.asarray(fa), rtol=1e-6, atol=1e-6)

    print("KERNEL_OK")
</pallas_src>

<mosaic_0001>
module attributes {stable_mosaic.version = 11 : i64} {
  func.func @_count_kernel(%arg0: i32, %arg1: memref<8x32xf32, #tpu.memory_space<vmem>>, %arg2: memref<2x1xi32, #tpu.memory_space<vmem>>) attributes {dimension_semantics = [#tpu.dimension_semantics<arbitrary>], iteration_bounds = array<i64: 2>, scalar_prefetch = 0 : i64, scratch_operands = 0 : i64, tpu.core_type = #tpu.core_type<tc>, window_params = [{transform_indices = @transform_0, window_bounds = array<i64: 8, 32>}, {pipeline_mode = #tpu.pipeline_mode<synchronous>, transform_indices = @transform_1, window_bounds = array<i64: 2, 1>}]} {
    %c0 = arith.constant 0 : index
    %c0_0 = arith.constant 0 : index
    %0 = vector.load %arg1[%c0, %c0_0] : memref<8x32xf32, #tpu.memory_space<vmem>>, vector<8x32xf32>
    %cst = arith.constant dense<0xFF800000> : vector<8xf32>
    %1 = vector.multi_reduction <maximumf>, %0, %cst [1] : vector<8x32xf32> to vector<8xf32>
    %2 = vector.shape_cast %1 : vector<8xf32> to vector<8x1xf32>
    %cst_1 = arith.constant 5.000000e-01 : f32
    %3 = vector.broadcast %cst_1 : f32 to vector<8x1xf32>
    %4 = arith.cmpf olt, %2, %3 : vector<8x1xf32>
    %cst_2 = arith.constant 9.99999997E-7 : f32
    %5 = vector.broadcast %cst_2 : f32 to vector<8x1xf32>
    %6 = arith.subf %2, %5 : vector<8x1xf32>
    %cst_3 = arith.constant 5.000000e-01 : f32
    %7 = vector.broadcast %cst_3 : f32 to vector<8x1xf32>
    %8 = arith.select %4, %6, %7 : vector<8x1xi1>, vector<8x1xf32>
    %9 = vector.broadcast %8 : vector<8x1xf32> to vector<8x32xf32>
    %10 = arith.cmpf ogt, %0, %9 : vector<8x32xf32>
    %11 = arith.extui %10 : vector<8x32xi1> to vector<8x32xi32>
    %cst_4 = arith.constant dense<0> : vector<8xi32>
    %12 = vector.multi_reduction <add>, %11, %cst_4 [1] : vector<8x32xi32> to vector<8xi32>
    %13 = vector.shape_cast %12 : vector<8xi32> to vector<8x1xi32>
    %c8_i32 = arith.constant 8 : i32
    %14 = arith.muli %arg0, %c8_i32 : i32
    %15 = tpu.iota {dimensions = array<i32: 0>} : vector<8x1xi32>
    %16 = vector.broadcast %14 : i32 to vector<8x1xi32>
    %17 = arith.addi %16, %15 : vector<8x1xi32>
    %c16_i32 = arith.constant 16 : i32
    %18 = vector.broadcast %c16_i32 : i32 to vector<8x1xi32>
    %19 = arith.cmpi slt, %17, %18 : vector<8x1xi32>
    %c0_i32 = arith.constant 0 : i32
    %20 = vector.broadcast %c0_i32 : i32 to vector<8x1xi32>
    %21 = arith.select %19, %13, %20 : vector<8x1xi1>, vector<8x1xi32>
    %cst_5 = arith.constant dense<-2147483648> : vector<1xi32>
    %22 = vector.multi_reduction <maxsi>, %21, %cst_5 [0] : vector<8x1xi32> to vector<1xi32>
    %23 = vector.shape_cast %22 : vector<1xi32> to vector<1x1xi32>
    %24 = arith.index_cast %arg0 : i32 to index
    %c0_6 = arith.constant 0 : index
    %25 = vector.load %arg2[%24, %c0_6] : memref<2x1xi32, #tpu.memory_space<vmem>>, vector<1x1xi32>
    tpu.vector_store %arg2[%24, %c0_6], %23 {strides = array<i32>} : memref<2x1xi32, #tpu.memory_space<vmem>>, vector<1x1xi32>,
    return
  }
  func.func @transform_0(%arg0: i32) -> (i32, i32) {
    %c0_i32 = arith.constant 0 : i32
    %c0_i32_0 = arith.constant 0 : i32
    return %arg0, %c0_i32 : i32, i32
  }
  func.func @transform_1(%arg0: i32) -> (i32, i32) {
    %c0_i32 = arith.constant 0 : i32
    %c0_i32_0 = arith.constant 0 : i32
    %c0_i32_1 = arith.constant 0 : i32
    return %c0_i32, %c0_i32_0 : i32, i32
  }
}

</mosaic_0001>

<bundles_post_ra>
// kernel: tpu_custom_call.1
= control target key start
LH: loop header
LB: loop body
LE: loop exit
PB: predicated region body
PF: predicated region fallthrough
CT: control target
= control target key end

     0   :  { %6 = vsyncpa [#allocation3], 0  ;;  %s428_s0 = inlined_call_operand.hbm [shape: f32[16,32], index: 0, kind: input, shape index: {}]   ;;  %s429_s1 = inlined_call_operand.vmem [shape: s32[2,1], index: 1, kind: output, shape index: {}]  }
   0x1   :  { %8 = vsyncpa [#allocation3 + $0x1], 0  ;;  %s328_s6 = smov 0   ;;  %s330_s7 = smov 0  }
   0x2   :  { %s332_s8 = smov 0   ;;  %s334_s9 = smov 0  }
   0x3 LB: > { %s347_s10 = sadd.s32 4294967295, %s314_s9   ;;  %s350_s11 = sadd.s32 1, %s314_s9   ;;  %s314_s9 = sphi %s334_s9, %s439_s9   ;;  %s310_s8 = sphi %s332_s8, %s438_s8   ;;  %s306_s7 = sphi %s330_s7, %s437_s7   ;;  %s302_s6 = sphi %s328_s6, %s436_s6  }
   0x4   : > { %s18_s12 = ssub.s32 %s314_s9, %s350_s11  ;;  %s21_s13 = sadd.s32 1, %s310_s8 }
   0x5   : > { %p19_p0 = scmp.eq.s32.totalorder %s18_s12, 0  ;;  %p28_p1 = scmp.ne.s32.totalorder %s310_s8, %s306_s7 }
   0x6   : > { %p29_p2 = scmp.eq.s32.totalorder %s314_s9, 0  ;;  %p34_p3 = scmp.ne.s32.totalorder %s306_s7, %s302_s6 }
   0x7   : > { %s360_s14 = scalar_select %p19_p0, %s310_s8, %s21_s13  }
   0x8   : > { %p30_p4 = por %p29_p2, %p28_p1  ;;  %p35_p5 = scmp.eq.s32.totalorder %s347_s10, 0 }
   0x9   : > { %p218_p6 = scmp.lt.s32.totalorder %s314_s9, 2  ;;  %s79_s16 = sand.u32 1, %s310_s8  }
   0xa   : > { %p364_p7 = por %p35_p5, %p34_p3  ;;  %s204_s17 = sshll.u32 %s79_s16, 3 }
   0xb   : > { %s205_s18 = sshll.u32 %s314_s9, 7  ;;  %s83_s22 = scalar_lea.vmem [#allocation2], %s204_s17 }
   0xc   : > { %s431_s15 = scalar_select %p364_p7, 1, 0 }
   0xd   : > { %s373_s21 = scalar_lea.hbm %s428_s0, %s205_s18  ;;  %s90_s23 = sshll.u32 %s83_s22, 4  ;;  %s375_s23 = int_to_ptr.vmem [resolvable:$true] %s90_s23 }
   0xe   : > { %p377_p8 = pnand %p218_p6, %p30_p4  ;;  %s80_s25 = scalar_lea.sflag [#allocation3], %s79_s16 }
   0xf   : > { %s252_s26 = scalar_lea.hbm %s373_s21, 128  ;;  %s257_s29 = scalar_lea.hbm %s428_s0, 256 }
  0x10   : > { %p253_p11 = scmp.ne.s32.totalorder %s373_s21, %s252_s26  ;;  %p254_p12 = pneg %p377_p8 }
  0x11   : > { %p258_p1 = scmp.lt.s32.totalorder %s373_s21, %s428_s0  ;;  %p259_p2 = scmp.lt.s32.totalorder %s257_s29, %s252_s26 }
  0x12   : > { %p255_p13 = pnand %p254_p12, %p253_p11 }
  0x13   : > { %p260_p3 = por %p259_p2, %p258_p1 }
  0x14   : > { %p256_p0 = pneg %p255_p13 }
  0x16   : > { %p261_p4 = pnand %p260_p3, %p256_p0 }
  0x18   : > { %264 = shalt.err (!%p261_p4)
}
  0x19   : > { %s265_s3 = scalar_lea.vmem %s375_s23, 128  ;;  %s316_s4 = smov [#allocation2]  }
  0x1a   : > { %p266_p5 = scmp.ne.s32.totalorder %s375_s23, %s265_s3  ;;  %s270_s5 = sshll.u32 %s316_s4, 4  ;;  %s271_s5 = int_to_ptr.vmem [resolvable:$false] %s270_s5 }
  0x1b   : > { %s272_s6 = scalar_lea.vmem %s271_s5, 256  ;;  %p273_p13 = scmp.lt.s32.totalorder %s375_s23, %s271_s5 }
  0x1c   : > { %p268_p6 = pnand %p266_p5, %p254_p12  ;;  %p274_p9 = scmp.lt.s32.totalorder %s272_s6, %s265_s3 }
  0x1e   : > { %p269_p11 = pneg %p268_p6  ;;  %p275_p10 = por %p274_p9, %p273_p13 }
  0x20   : > { %p276_p7 = pnand %p275_p10, %p269_p11 }
  0x22   : > { %279 = shalt.err (!%p276_p7)
}
  0x23   : > { %217 = dma.hbm_to_vmem [thread:$0]  (!%p377_p8), %s373_s21, 128, %s375_s23, %s80_s25  }
  0x24   : > { %p433_p0 = scmp.lt.s32.totalorder %s314_s9, 3  ;;  %p434_p1 = scmp.ge.s32.totalorder %s314_s9, 1 }
  0x26   : > { %p96_p12 = pnand %p434_p1, %p433_p0 }
  0x27   : > { %s101_s12 = sand.u32 (!%p96_p12), 1, %s306_s7   ;;  %p435_p9 = scmp.ne.s32.totalorder (!%p96_p12), %s431_s15, 0 }
  0x28   : > { %99 = sbr.rel (%p96_p12) target bundleno = 354 (0x162), region = 24  ;;  %s207_s13 = sshll.u32 (!%p96_p12), %s101_s12, 3 }
  0x29   : > { %s102_s16 = scalar_lea.sflag (!%p96_p12), [#allocation3], %s101_s12  ;;  %s105_s17 = scalar_lea.vmem (!%p96_p12), [#allocation2], %s207_s13 }
  0x2d   : > { %297 = dma.done.wait (%p435_p9), %s102_s16, 128  }
  0x2e   : > { %299 = vsyncadd (%p435_p9), %s102_s16, 4294967168  ;;  %vm120_vm0 = vcmask 261120   ;;  %v119_v0 = vld [vmem:[%s105_s17] sm:$0xff]  ;;  %v317_v5 = vmov 0   ;;  %v143_v12 = vlaneseq  ;;  %s209_s9 = sshll.u32 %s347_s10, 3  ;;  %s158_s19 = scalar_lea.vmem %s429_s1, %s347_s10  ;;  %vm159_vm6 = vcmask 0  }
  0x2f   : > { %v121_v1 = vsel %vm120_vm0, %v119_v0, -inf  ;;  %v145_v14 = vstv %s209_s9 }
  0x30   : > { %122 = vmax.xlane.f32.xlu0 %v121_v1  ;;  %v144_v13 = vshrl.u32 %v143_v12, 7 }
  0x32   : > { %v146_v16 = vadd.s32 %v145_v14, %v144_v13 }
  0x34   : > { %vm147_vm3 = vcmp.lt.s32.totalorder %v146_v16, 16 }
  0xb9   : > { %v123_v2 = vpop.xlane.xlu0 %122 }
  0xba   : > { %vm124_vm1 = vcmp.lt.f32.partialorder %v123_v2, 0.5  ;;  %v208_v3 = vadd.f32 -1e-06, %v123_v2 }
  0xbc   : > { %v126_v4 = vsel %vm124_vm1, %v208_v3, 0.5 }
  0xbd   : > { %vm127_vm2 = vcmp.gt.f32.partialorder %v119_v0, %v126_v4 }
  0xbe   : > { %v128_v6 = vsel %vm127_vm2, 1, %v317_v5 }
  0xbf   : > { %v129_v7 = vsel %vm120_vm0, %v128_v6, 0 }
  0xc0   : > { %v131_v8 = vshrl.u32 %v129_v7, 16  ;;  %v130_v9 = vand.u32 65535, %v129_v7 }
  0xc2   : > { %v133_v10 = vcvt.s32.f32 %v131_v8  ;;  %v132_v11 = vcvt.s32.f32 %v130_v9 }
  0xc4   : > { %136 = vadd.xlane.f32.xlu0 %v133_v10  ;;  %134 = vadd.xlane.f32.xlu1 %v132_v11 }
 0x14d   : > { %v137_v15 = vpop.xlane.xlu0 %136  ;;  %v135_v17 = vpop.xlane.xlu1 %134 }
 0x14e   : > { %v139_v18 = vcvt.f32.s32 %v137_v15  ;;  %v138_v20 = vcvt.f32.s32 %v135_v17 }
 0x150   : > { %v140_v19 = vshll.u32 %v139_v18, 16 }
 0x152   : > { %v141_v21 = vadd.s32 %v140_v19, %v138_v20 }
 0x154   : > { %v148_v22 = vsel %vm147_vm3, %v141_v21, 0 }
 0x155   : > { %v149_v23 = vrot.slane %v148_v22, 4 }
 0x157   : > { %vm150_vm4 = vcmp.gt.s32.totalorder %v148_v22, %v149_v23 }
 0x158   : > { %v151_v24 = vsel %vm150_vm4, %v148_v22, %v149_v23 }
 0x159   : > { %v152_v25 = vrot.slane %v151_v24, 2 }
 0x15b   : > { %vm153_vm5 = vcmp.gt.s32.totalorder %v151_v24, %v152_v25 }
 0x15c   : > { %v154_v26 = vsel %vm153_vm5, %v151_v24, %v152_v25 }
 0x15d   : > { %v155_v27 = vrot.slane %v154_v26, 1 }
 0x15f   : > { %vm156_vm7 = vcmp.gt.s32.totalorder %v154_v26, %v155_v27 }
 0x160   : > { %v157_v28 = vsel %vm156_vm7, %v154_v26, %v155_v27 }
 0x161   : > { %160 = vst.msk [vmem:[%s158_s19] sm:$0x1] %vm159_vm6, %v157_v28 }
 0x162 PF: > { %p11_p7 = scmp.ge.s32.totalorder %s350_s11, 4   ;;  %s436_s6 = smov %s306_s7 }
 0x163   : > { %s437_s7 = smov %s310_s8  ;;  %s438_s8 = smov %s360_s14 }
 0x164   : > { %s439_s9 = smov %s350_s11  ;;  %13 = sbr.rel (!%p11_p7) target bundleno = 3 (0x3), region = 61 }
 0x169   :  { %172 = vsyncpa [#allocation3], 1 }
 0x16a   :  { %174 = vsyncpa [#allocation3 + $0x1], 1 }

</bundles_post_ra>
